<compile_context>
chip_gen: v6e
topology: v6e:2x2x1
jax: 0.10.0
libtpu: 0.0.40
codegen_flags: <defaults>
</compile_context>

<pallas_src>
import functools

import jax
import jax.numpy as jnp
from jax import lax
from jax.experimental import pallas as pl
from jax.experimental.pallas import tpu as pltpu


def _round_up(x, m):
    return ((x + m - 1) // m) * m


def _conv_block_kernel(*refs, H, W, Cin, Cin_pad, Cout, padl, slope, eps,
                       normalization):
    if normalization:
        x_ref, w_ref, o_ref, xpad_ref, patches_ref = refs
        b_ref = None
    else:
        x_ref, w_ref, b_ref, o_ref, xpad_ref, patches_ref = refs

    HW = H * W

    # 1) Stage the (Cin, H*W) sample into a zero-padded scratch row so any tap
    #    whose source row falls outside the image reads zeros (padding=1 halo
    #    in the vertical direction).  Zeroing the whole slab (a few vregs)
    #    also keeps the padded channel rows free of stale NaN/Inf bits so the
    #    zero-weight columns really contribute zero.
    xpad_ref[...] = jnp.zeros_like(xpad_ref)
    xpad_ref[:Cin, padl:padl + HW] = x_ref[...].astype(jnp.float32)

    # Horizontal (width) edge masks, hoisted out of the tap loop: a +-1 shift
    # of the flat index wraps across image rows, so those taps need masking.
    w_idx = lax.broadcasted_iota(jnp.int32, (1, HW), 1) % W
    ok_left = w_idx >= 1          # source column w-1 is in range
    ok_right = w_idx <= W - 2     # source column w+1 is in range

    # 2) im2col: 9 shifted (and edge-masked) copies stacked along K
    #    (tap-major, channel-minor; each tap block is Cin_pad rows, aligned).
    for kh in range(3):
        for kw in range(3):
            dh, dw = kh - 1, kw - 1
            s = dh * W + dw                                  # flat src offset
            tap = kh * 3 + kw
            shifted = xpad_ref[:, padl + s:padl + s + HW]    # (Cin_pad, HW)
            if dw == -1:
                shifted = jnp.where(ok_left, shifted, 0.0)
            elif dw == 1:
                shifted = jnp.where(ok_right, shifted, 0.0)
            patches_ref[tap * Cin_pad:(tap + 1) * Cin_pad, :] = shifted

    # 3) Single MXU matmul with spatial on the lane axis:
    #    (Cout, 9*Cin_pad) @ (9*Cin_pad, HW) -> (Cout, HW).
    acc = jnp.dot(w_ref[...], patches_ref[...],
                  preferred_element_type=jnp.float32)

    if normalization:
        # InstanceNorm2d: per-channel mean/var over spatial dims (biased var,
        # no affine).  Conv bias is a no-op here and was never loaded.
        mean = jnp.mean(acc, axis=1, keepdims=True)
        centered = acc - mean
        var = jnp.mean(centered * centered, axis=1, keepdims=True)
        acc = centered * lax.rsqrt(var + eps)
    else:
        acc = acc + b_ref[...]                               # (Cout, 1) bcast

    # LeakyReLU + lane-dense store (block last dim == full HW).
    o_ref[...] = jnp.where(acc > 0, acc, slope * acc).astype(o_ref.dtype)


def conv_block(x_nchw, weight_oihw, bias=None, *, slope=0.2, eps=1e-5,
               normalization=True):
    """Forward of ConvBlock(dim=2).  x_nchw: (N, Cin, H, W)."""
    N, Cin, H, W = x_nchw.shape
    Cout = weight_oihw.shape[0]
    HW = H * W
    Cin_pad = _round_up(Cin, 8)          # channels rounded up to a sublane tile
    padl = _round_up(W + 1, 128)         # lane-aligned halo wide enough for +-(W+1)

    # Input stays NCHW: only a contiguous flatten of the spatial dims so that
    # spatial sits on the lane axis and channels on sublanes.
    x_flat = x_nchw.reshape(N, Cin, HW)

    # OIHW -> (Cout, 9*Cin_pad), K ordered tap-major / channel-minor with the
    # padded channel slots zeroed (matches the in-kernel patches layout).
    w_taps = jnp.transpose(weight_oihw, (0, 2, 3, 1))          # (Cout, 3, 3, Cin)
    w_taps = jnp.pad(w_taps, ((0, 0), (0, 0), (0, 0), (0, Cin_pad - Cin)))
    w_mat = w_taps.reshape(Cout, 9 * Cin_pad).astype(jnp.float32)

    kernel = functools.partial(
        _conv_block_kernel, H=H, W=W, Cin=Cin, Cin_pad=Cin_pad, Cout=Cout,
        padl=padl, slope=slope, eps=eps, normalization=normalization)

    in_specs = [
        pl.BlockSpec((None, Cin, HW), lambda n: (n, 0, 0)),
        pl.BlockSpec((Cout, 9 * Cin_pad), lambda n: (0, 0)),
    ]
    args = [x_flat, w_mat]
    if not normalization:
        in_specs.append(pl.BlockSpec((Cout, 1), lambda n: (0, 0)))
        args.append(bias.reshape(Cout, 1).astype(jnp.float32))

    out_flat = pl.pallas_call(
        kernel,
        out_shape=jax.ShapeDtypeStruct((N, Cout, HW), x_nchw.dtype),
        grid=(N,),
        in_specs=in_specs,
        out_specs=pl.BlockSpec((None, Cout, HW), lambda n: (n, 0, 0)),
        scratch_shapes=[
            pltpu.VMEM((Cin_pad, HW + 2 * padl), jnp.float32),  # halo-padded input
            pltpu.VMEM((9 * Cin_pad, HW), jnp.float32),         # im2col patches
        ],
        compiler_params=pltpu.CompilerParams(
            dimension_semantics=("parallel",)),
    )(*args)

    # Contiguous un-flatten back to PyTorch NCHW.
    return out_flat.reshape(N, Cout, H, W)


def conv_block_reference(x_nchw, weight_oihw, bias, *, slope=0.2, eps=1e-5,
                         normalization=True):
    """Pure-JAX reference matching the PyTorch module."""
    out = lax.conv_general_dilated(
        x_nchw, weight_oihw, window_strides=(1, 1), padding="SAME",
        dimension_numbers=("NCHW", "OIHW", "NCHW"))
    out = out + bias[None, :, None, None]
    if normalization:
        mean = out.mean(axis=(2, 3), keepdims=True)
        var = ((out - mean) ** 2).mean(axis=(2, 3), keepdims=True)
        out = (out - mean) / jnp.sqrt(var + eps)
    return jnp.where(out > 0, out, slope * out)


# TODO(synk): dim=3 variant (Conv3d/InstanceNorm3d) not implemented; this
# kernel covers the dim=2 branch of ConvBlock.

if __name__ == "__main__":
    key = jax.random.PRNGKey(0)
    k_x, k_w, k_b = jax.random.split(key, 3)

    N, Cin, H, W = 2, 4, 16, 16
    Cout = 8

    x = jax.random.normal(k_x, (N, Cin, H, W), dtype=jnp.float32)
    fan_in = Cin * 3 * 3
    bound = 1.0 / (fan_in ** 0.5)
    weight = jax.random.uniform(k_w, (Cout, Cin, 3, 3), dtype=jnp.float32,
                                minval=-bound, maxval=bound)
    bias = jax.random.uniform(k_b, (Cout,), dtype=jnp.float32,
                              minval=-bound, maxval=bound)

    # ConvBlock(..., normalization=True): Conv -> InstanceNorm -> LeakyReLU
    out = jax.block_until_ready(conv_block(x, weight, bias, normalization=True))
    ref = conv_block_reference(x, weight, bias, normalization=True)
    assert out.shape == (N, Cout, H, W)
    assert jnp.allclose(out, ref, rtol=1e-4, atol=1e-4), "mismatch (norm=True)"

    # ConvBlock(..., normalization=False): Conv (+bias) -> LeakyReLU
    out2 = jax.block_until_ready(conv_block(x, weight, bias, normalization=False))
    ref2 = conv_block_reference(x, weight, bias, normalization=False)
    assert jnp.allclose(out2, ref2, rtol=1e-4, atol=1e-4), "mismatch (norm=False)"

    print("KERNEL_OK")
</pallas_src>

<mosaic_0001>
module attributes {stable_mosaic.version = 11 : i64} {
  func.func @_conv_block_kernel(%arg0: i32, %arg1: memref<1x4x256xf32, #tpu.memory_space<vmem>>, %arg2: memref<8x72xf32, #tpu.memory_space<vmem>>, %arg3: memref<1x8x256xf32, #tpu.memory_space<vmem>>, %arg4: memref<8x512xf32, #tpu.memory_space<vmem>>, %arg5: memref<72x256xf32, #tpu.memory_space<vmem>>) attributes {dimension_semantics = [#tpu.dimension_semantics<parallel>], iteration_bounds = array<i64: 2>, scalar_prefetch = 0 : i64, scratch_operands = 2 : i64, tpu.core_type = #tpu.core_type<tc>, window_params = [{transform_indices = @transform_0, window_bounds = array<i64: 1, 4, 256>}, {pipeline_mode = #tpu.pipeline_mode<synchronous>, transform_indices = @transform_1, window_bounds = array<i64: 8, 72>}, {transform_indices = @transform_2, window_bounds = array<i64: 1, 8, 256>}]} {
    %cst = arith.constant 0.000000e+00 : f32
    %0 = vector.broadcast %cst : f32 to vector<8x512xf32>
    %c0 = arith.constant 0 : index
    %c0_0 = arith.constant 0 : index
    %1 = vector.load %arg4[%c0, %c0_0] : memref<8x512xf32, #tpu.memory_space<vmem>>, vector<8x512xf32>
    tpu.vector_store %arg4[%c0, %c0_0], %0 {strides = array<i32>} : memref<8x512xf32, #tpu.memory_space<vmem>>, vector<8x512xf32>,
    %c0_1 = arith.constant 0 : index
    %c0_2 = arith.constant 0 : index
    %c0_3 = arith.constant 0 : index
    %2 = vector.load %arg1[%c0_1, %c0_2, %c0_3] : memref<1x4x256xf32, #tpu.memory_space<vmem>>, vector<1x4x256xf32>
    %3 = vector.shape_cast %2 : vector<1x4x256xf32> to vector<4x256xf32>
    %c0_4 = arith.constant 0 : index
    %c128 = arith.constant 128 : index
    %4 = vector.load %arg4[%c0_4, %c128] : memref<8x512xf32, #tpu.memory_space<vmem>>, vector<4x256xf32>
    tpu.vector_store %arg4[%c0_4, %c128], %3 {strides = array<i32>} : memref<8x512xf32, #tpu.memory_space<vmem>>, vector<4x256xf32>,
    %5 = tpu.iota {dimensions = array<i32: 1>} : vector<1x256xi32>
    %c16_i32 = arith.constant 16 : i32
    %c0_i32 = arith.constant 0 : i32
    %6 = arith.cmpi eq, %c16_i32, %c0_i32 : i32
    %c1_i32 = arith.constant 1 : i32
    %7 = arith.select %6, %c1_i32, %c16_i32 : i32
    %8 = vector.broadcast %7 : i32 to vector<1x256xi32>
    %9 = arith.remsi %5, %8 : vector<1x256xi32>
    %c0_i32_5 = arith.constant 0 : i32
    %10 = vector.broadcast %c0_i32_5 : i32 to vector<1x256xi32>
    %11 = arith.cmpi ne, %9, %10 : vector<1x256xi32>
    %c0_i32_6 = arith.constant 0 : i32
    %12 = vector.broadcast %c0_i32_6 : i32 to vector<1x256xi32>
    %13 = arith.cmpi slt, %9, %12 : vector<1x256xi32>
    %c0_i32_7 = arith.constant 0 : i32
    %14 = arith.cmpi slt, %7, %c0_i32_7 : i32
    %15 = vector.broadcast %14 : i1 to vector<1x256xi1>
    %16 = vector.broadcast %15 : vector<1x256xi1> to vector<1x256xi1>
    %17 = arith.xori %13, %16 : vector<1x256xi1>
    %18 = arith.andi %17, %11 : vector<1x256xi1>
    %19 = vector.broadcast %7 : i32 to vector<1x256xi32>
    %20 = arith.addi %9, %19 : vector<1x256xi32>
    %21 = arith.select %18, %20, %9 : vector<1x256xi1>, vector<1x256xi32>
    %c1_i32_8 = arith.constant 1 : i32
    %22 = vector.broadcast %c1_i32_8 : i32 to vector<1x256xi32>
    %23 = arith.cmpi sge, %21, %22 : vector<1x256xi32>
    %c14_i32 = arith.constant 14 : i32
    %24 = vector.broadcast %c14_i32 : i32 to vector<1x256xi32>
    %25 = arith.cmpi sle, %21, %24 : vector<1x256xi32>
    %c0_9 = arith.constant 0 : index
    %c111 = arith.constant 111 : index
    %26 = vector.load %arg4[%c0_9, %c111] : memref<8x512xf32, #tpu.memory_space<vmem>>, vector<8x256xf32>
    %cst_10 = arith.constant 0.000000e+00 : f32
    %27 = vector.shape_cast %23 : vector<1x256xi1> to vector<1x256xi1>
    %28 = vector.broadcast %27 : vector<1x256xi1> to vector<8x256xi1>
    %29 = vector.broadcast %cst_10 : f32 to vector<8x256xf32>
    %30 = arith.select %28, %26, %29 : vector<8x256xi1>, vector<8x256xf32>
    %c0_11 = arith.constant 0 : index
    %c0_12 = arith.constant 0 : index
    %31 = vector.load %arg5[%c0_11, %c0_12] : memref<72x256xf32, #tpu.memory_space<vmem>>, vector<8x256xf32>
    tpu.vector_store %arg5[%c0_11, %c0_12], %30 {strides = array<i32>} : memref<72x256xf32, #tpu.memory_space<vmem>>, vector<8x256xf32>,
    %c0_13 = arith.constant 0 : index
    %c112 = arith.constant 112 : index
    %32 = vector.load %arg4[%c0_13, %c112] : memref<8x512xf32, #tpu.memory_space<vmem>>, vector<8x256xf32>
    %c8 = arith.constant 8 : index
    %c0_14 = arith.constant 0 : index
    %33 = vector.load %arg5[%c8, %c0_14] : memref<72x256xf32, #tpu.memory_space<vmem>>, vector<8x256xf32>
    tpu.vector_store %arg5[%c8, %c0_14], %32 {strides = array<i32>} : memref<72x256xf32, #tpu.memory_space<vmem>>, vector<8x256xf32>,
    %c0_15 = arith.constant 0 : index
    %c113 = arith.constant 113 : index
    %34 = vector.load %arg4[%c0_15, %c113] : memref<8x512xf32, #tpu.memory_space<vmem>>, vector<8x256xf32>
    %cst_16 = arith.constant 0.000000e+00 : f32
    %35 = vector.shape_cast %25 : vector<1x256xi1> to vector<1x256xi1>
    %36 = vector.broadcast %35 : vector<1x256xi1> to vector<8x256xi1>
    %37 = vector.broadcast %cst_16 : f32 to vector<8x256xf32>
    %38 = arith.select %36, %34, %37 : vector<8x256xi1>, vector<8x256xf32>
    %c16 = arith.constant 16 : index
    %c0_17 = arith.constant 0 : index
    %39 = vector.load %arg5[%c16, %c0_17] : memref<72x256xf32, #tpu.memory_space<vmem>>, vector<8x256xf32>
    tpu.vector_store %arg5[%c16, %c0_17], %38 {strides = array<i32>} : memref<72x256xf32, #tpu.memory_space<vmem>>, vector<8x256xf32>,
    %c0_18 = arith.constant 0 : index
    %c127 = arith.constant 127 : index
    %40 = vector.load %arg4[%c0_18, %c127] : memref<8x512xf32, #tpu.memory_space<vmem>>, vector<8x256xf32>
    %cst_19 = arith.constant 0.000000e+00 : f32
    %41 = vector.shape_cast %23 : vector<1x256xi1> to vector<1x256xi1>
    %42 = vector.broadcast %41 : vector<1x256xi1> to vector<8x256xi1>
    %43 = vector.broadcast %cst_19 : f32 to vector<8x256xf32>
    %44 = arith.select %42, %40, %43 : vector<8x256xi1>, vector<8x256xf32>
    %c24 = arith.constant 24 : index
    %c0_20 = arith.constant 0 : index
    %45 = vector.load %arg5[%c24, %c0_20] : memref<72x256xf32, #tpu.memory_space<vmem>>, vector<8x256xf32>
    tpu.vector_store %arg5[%c24, %c0_20], %44 {strides = array<i32>} : memref<72x256xf32, #tpu.memory_space<vmem>>, vector<8x256xf32>,
    %c0_21 = arith.constant 0 : index
    %c128_22 = arith.constant 128 : index
    %46 = vector.load %arg4[%c0_21, %c128_22] : memref<8x512xf32, #tpu.memory_space<vmem>>, vector<8x256xf32>
    %c32 = arith.constant 32 : index
    %c0_23 = arith.constant 0 : index
    %47 = vector.load %arg5[%c32, %c0_23] : memref<72x256xf32, #tpu.memory_space<vmem>>, vector<8x256xf32>
    tpu.vector_store %arg5[%c32, %c0_23], %46 {strides = array<i32>} : memref<72x256xf32, #tpu.memory_space<vmem>>, vector<8x256xf32>,
    %c0_24 = arith.constant 0 : index
    %c129 = arith.constant 129 : index
    %48 = vector.load %arg4[%c0_24, %c129] : memref<8x512xf32, #tpu.memory_space<vmem>>, vector<8x256xf32>
    %cst_25 = arith.constant 0.000000e+00 : f32
    %49 = vector.shape_cast %25 : vector<1x256xi1> to vector<1x256xi1>
    %50 = vector.broadcast %49 : vector<1x256xi1> to vector<8x256xi1>
    %51 = vector.broadcast %cst_25 : f32 to vector<8x256xf32>
    %52 = arith.select %50, %48, %51 : vector<8x256xi1>, vector<8x256xf32>
    %c40 = arith.constant 40 : index
    %c0_26 = arith.constant 0 : index
    %53 = vector.load %arg5[%c40, %c0_26] : memref<72x256xf32, #tpu.memory_space<vmem>>, vector<8x256xf32>
    tpu.vector_store %arg5[%c40, %c0_26], %52 {strides = array<i32>} : memref<72x256xf32, #tpu.memory_space<vmem>>, vector<8x256xf32>,
    %c0_27 = arith.constant 0 : index
    %c143 = arith.constant 143 : index
    %54 = vector.load %arg4[%c0_27, %c143] : memref<8x512xf32, #tpu.memory_space<vmem>>, vector<8x256xf32>
    %cst_28 = arith.constant 0.000000e+00 : f32
    %55 = vector.shape_cast %23 : vector<1x256xi1> to vector<1x256xi1>
    %56 = vector.broadcast %55 : vector<1x256xi1> to vector<8x256xi1>
    %57 = vector.broadcast %cst_28 : f32 to vector<8x256xf32>
    %58 = arith.select %56, %54, %57 : vector<8x256xi1>, vector<8x256xf32>
    %c48 = arith.constant 48 : index
    %c0_29 = arith.constant 0 : index
    %59 = vector.load %arg5[%c48, %c0_29] : memref<72x256xf32, #tpu.memory_space<vmem>>, vector<8x256xf32>
    tpu.vector_store %arg5[%c48, %c0_29], %58 {strides = array<i32>} : memref<72x256xf32, #tpu.memory_space<vmem>>, vector<8x256xf32>,
    %c0_30 = arith.constant 0 : index
    %c144 = arith.constant 144 : index
    %60 = vector.load %arg4[%c0_30, %c144] : memref<8x512xf32, #tpu.memory_space<vmem>>, vector<8x256xf32>
    %c56 = arith.constant 56 : index
    %c0_31 = arith.constant 0 : index
    %61 = vector.load %arg5[%c56, %c0_31] : memref<72x256xf32, #tpu.memory_space<vmem>>, vector<8x256xf32>
    tpu.vector_store %arg5[%c56, %c0_31], %60 {strides = array<i32>} : memref<72x256xf32, #tpu.memory_space<vmem>>, vector<8x256xf32>,
    %c0_32 = arith.constant 0 : index
    %c145 = arith.constant 145 : index
    %62 = vector.load %arg4[%c0_32, %c145] : memref<8x512xf32, #tpu.memory_space<vmem>>, vector<8x256xf32>
    %cst_33 = arith.constant 0.000000e+00 : f32
    %63 = vector.shape_cast %25 : vector<1x256xi1> to vector<1x256xi1>
    %64 = vector.broadcast %63 : vector<1x256xi1> to vector<8x256xi1>
    %65 = vector.broadcast %cst_33 : f32 to vector<8x256xf32>
    %66 = arith.select %64, %62, %65 : vector<8x256xi1>, vector<8x256xf32>
    %c64 = arith.constant 64 : index
    %c0_34 = arith.constant 0 : index
    %67 = vector.load %arg5[%c64, %c0_34] : memref<72x256xf32, #tpu.memory_space<vmem>>, vector<8x256xf32>
    tpu.vector_store %arg5[%c64, %c0_34], %66 {strides = array<i32>} : memref<72x256xf32, #tpu.memory_space<vmem>>, vector<8x256xf32>,
    %c0_35 = arith.constant 0 : index
    %c0_36 = arith.constant 0 : index
    %68 = vector.load %arg2[%c0_35, %c0_36] : memref<8x72xf32, #tpu.memory_space<vmem>>, vector<8x72xf32>
    %c0_37 = arith.constant 0 : index
    %c0_38 = arith.constant 0 : index
    %69 = vector.load %arg5[%c0_37, %c0_38] : memref<72x256xf32, #tpu.memory_space<vmem>>, vector<72x256xf32>
    %cst_39 = arith.constant dense<0.000000e+00> : vector<8x256xf32>
    %70 = tpu.matmul %68, %69, %cst_39 {dimension_numbers = #tpu.dot_dimension_numbers<[1], [0], [0], [1], [0, 0, 1, 1], [], []>} : vector<8x72xf32>, vector<72x256xf32>, vector<8x256xf32> -> vector<8x256xf32>
    %cst_40 = arith.constant dense<0.000000e+00> : vector<8xf32>
    %71 = vector.multi_reduction <add>, %70, %cst_40 [1] : vector<8x256xf32> to vector<8xf32>
    %72 = vector.shape_cast %71 : vector<8xf32> to vector<8x1xf32>
    %cst_41 = arith.constant 2.560000e+02 : f32
    %73 = vector.broadcast %cst_41 : f32 to vector<8x1xf32>
    %74 = arith.divf %72, %73 : vector<8x1xf32>
    %75 = vector.broadcast %74 : vector<8x1xf32> to vector<8x256xf32>
    %76 = arith.subf %70, %75 : vector<8x256xf32>
    %77 = arith.mulf %76, %76 : vector<8x256xf32>
    %cst_42 = arith.constant dense<0.000000e+00> : vector<8xf32>
    %78 = vector.multi_reduction <add>, %77, %cst_42 [1] : vector<8x256xf32> to vector<8xf32>
    %79 = vector.shape_cast %78 : vector<8xf32> to vector<8x1xf32>
    %cst_43 = arith.constant 2.560000e+02 : f32
    %80 = vector.broadcast %cst_43 : f32 to vector<8x1xf32>
    %81 = arith.divf %79, %80 : vector<8x1xf32>
    %cst_44 = arith.constant 9.99999974E-6 : f32
    %82 = vector.broadcast %cst_44 : f32 to vector<8x1xf32>
    %83 = arith.addf %81, %82 : vector<8x1xf32>
    %84 = math.rsqrt %83 : vector<8x1xf32>
    %85 = vector.broadcast %84 : vector<8x1xf32> to vector<8x256xf32>
    %86 = arith.mulf %76, %85 : vector<8x256xf32>
    %cst_45 = arith.constant 0.000000e+00 : f32
    %87 = vector.broadcast %cst_45 : f32 to vector<8x256xf32>
    %88 = arith.cmpf ogt, %86, %87 : vector<8x256xf32>
    %cst_46 = arith.constant 2.000000e-01 : f32
    %89 = vector.broadcast %cst_46 : f32 to vector<8x256xf32>
    %90 = arith.mulf %89, %86 : vector<8x256xf32>
    %91 = arith.select %88, %86, %90 : vector<8x256xi1>, vector<8x256xf32>
    %c0_47 = arith.constant 0 : index
    %c0_48 = arith.constant 0 : index
    %c0_49 = arith.constant 0 : index
    %92 = vector.load %arg3[%c0_47, %c0_48, %c0_49] : memref<1x8x256xf32, #tpu.memory_space<vmem>>, vector<1x8x256xf32>
    %93 = vector.shape_cast %92 : vector<1x8x256xf32> to vector<8x256xf32>
    %94 = vector.shape_cast %91 : vector<8x256xf32> to vector<1x8x256xf32>
    tpu.vector_store %arg3[%c0_47, %c0_48, %c0_49], %94 {strides = array<i32>} : memref<1x8x256xf32, #tpu.memory_space<vmem>>, vector<1x8x256xf32>,
    return
  }
  func.func @transform_0(%arg0: i32) -> (i32, i32, i32) {
    %c0_i32 = arith.constant 0 : i32
    %c0_i32_0 = arith.constant 0 : i32
    %c0_i32_1 = arith.constant 0 : i32
    return %arg0, %c0_i32, %c0_i32_0 : i32, i32, i32
  }
  func.func @transform_1(%arg0: i32) -> (i32, i32) {
    %c0_i32 = arith.constant 0 : i32
    %c0_i32_0 = arith.constant 0 : i32
    %c0_i32_1 = arith.constant 0 : i32
    return %c0_i32, %c0_i32_0 : i32, i32
  }
  func.func @transform_2(%arg0: i32) -> (i32, i32, i32) {
    %c0_i32 = arith.constant 0 : i32
    %c0_i32_0 = arith.constant 0 : i32
    %c0_i32_1 = arith.constant 0 : i32
    return %arg0, %c0_i32, %c0_i32_0 : i32, i32, i32
  }
}

</mosaic_0001>

<bundles_post_ra>
// kernel: tpu_custom_call.1
= control target key start
LH: loop header
LB: loop body
LE: loop exit
PB: predicated region body
PF: predicated region fallthrough
CT: control target
= control target key end

     0   :  { %7 = vsyncpa [#allocation5], 0  ;;  %s1096_s0 = inlined_call_operand.hbm [shape: f32[2,4,256], index: 0, kind: input, shape index: {}]   ;;  %s1097_s1 = inlined_call_operand.hbm [shape: f32[8,72], index: 1, kind: input, shape index: {}]   ;;  %s1098_s2 = inlined_call_operand.hbm [shape: f32[2,8,256], index: 2, kind: output, shape index: {}]  }
   0x1   :  { %9 = vsyncpa [#allocation5 + $0x1], 0 }
   0x2   :  { %10 = vsyncpa [#allocation8], 0 }
   0x3   :  { %11 = vsyncpa [#allocation6], 0 }
   0x4   :  { %13 = vsyncpa [#allocation6 + $0x1], 0  ;;  %s855_s9 = smov 0   ;;  %s857_s10 = smov 0  }
   0x5   :  { %s859_s11 = smov 0   ;;  %s861_s12 = smov 0  }
   0x6 LB: > { %s876_s13 = sadd.s32 4294967295, %s826_s12   ;;  %s604_s14 = sadd.s32 4294967294, %s826_s12   ;;  %s826_s12 = sphi %s861_s12, %s1129_s12   ;;  %s822_s11 = sphi %s859_s11, %s1128_s11   ;;  %s818_s10 = sphi %s857_s10, %s1127_s10   ;;  %s814_s9 = sphi %s855_s9, %s1126_s9  }
   0x7   : > { %p39_p0 = scmp.ne.s32.totalorder %s818_s10, %s814_s9  ;;  %p1099_p1 = scmp.eq.s32.totalorder %s876_s13, 0 }
   0x8   : > { %p90_p3 = scmp.eq.s32.totalorder %s604_s14, 1  ;;  %p605_p5 = scmp.ge.s32.totalorder %s826_s12, 1 }
   0x9   : > { %p885_p4 = por %p1099_p1, %p39_p0  ;;  %p97_p7 = scmp.lt.s32.totalorder %s826_s12, 3 }
   0xa   : > { %p890_p6 = por %p90_p3, %p39_p0  ;;  %s828_s18 = smov [#allocation7]  }
   0xb   : > { %s1103_s15 = scalar_select %p885_p4, 1, 0 }
   0xc   : > { %s1104_s16 = scalar_select %p890_p6, 1, 0 }
   0xd   : > { %p895_p8 = pnand %p605_p5, %p97_p7  ;;  %s110_s19 = sshll.u32 %s828_s18, 4  ;;  %s111_s19 = int_to_ptr.vmem [resolvable:$true] %s110_s19 }
   0xe   : > { %s903_s20 = sadd.s32 1, %s826_s12   ;;  %s26_s24 = sadd.s32 1, %s822_s11 }
   0xf   : > { %s1105_s17 = scalar_select %p895_p8, 1, 0 }
  0x10   : > { %p643_p10 = pneg %p895_p8  ;;  %s23_s22 = ssub.s32 %s826_s12, %s903_s20 }
  0x11   : > { %p913_p12 = scmp.eq.s32.totalorder %s23_s22, 0  ;;  %p33_p13 = scmp.ne.s32.totalorder %s822_s11, %s818_s10 }
  0x12   : > { %p907_p11 = pnand %p643_p10, %p1099_p1  ;;  %s715_s25 = scalar_lea.vmem %s111_s19, 128 }
  0x13   : > { %p716_p3 = scmp.ne.s32.totalorder %s111_s19, %s715_s25  ;;  %p723_p9 = scmp.lt.s32.totalorder %s111_s19, %s111_s19 }
  0x14   : > { %p706_p0 = pneg %p907_p11  ;;  %p724_p2 = scmp.lt.s32.totalorder %s715_s25, %s715_s25 }
  0x16   : > { %p718_p5 = pnand %p716_p3, %p706_p0  ;;  %p725_p10 = por %p724_p2, %p723_p9 }
  0x18   : > { %p719_p7 = pneg %p718_p5 }
  0x1a   : > { %p726_p1 = pnand %p725_p10, %p719_p7 }
  0x1c   : > { %729 = shalt.err (!%p726_p1)
}
  0x1d   : > { %646 = dma.hbm_to_vmem [thread:$0]  (!%p907_p11), %s1097_s1, 128, %s111_s19, [#allocation8]  }
  0x1e   : > { %s930_s28 = scalar_select %p913_p12, %s822_s11, %s26_s24  }
  0x1f   : > { %p34_p1 = scmp.eq.s32.totalorder %s826_s12, 0  ;;  %p1108_p2 = scmp.eq.s32.totalorder %s876_s13, 1 }
  0x20   : > { %p656_p0 = scmp.lt.s32.totalorder %s826_s12, 2  ;;  %s121_s30 = sand.u32 1, %s822_s11  }
  0x21   : > { %p938_p9 = por %p1108_p2, %p33_p13  ;;  %p35_p3 = por %p34_p1, %p33_p13 }
  0x22   : > { %s608_s3 = sshll.u32 %s121_s30, 3  ;;  %s621_s4 = sshll.u32 %s826_s12, 7 }
  0x23   : > { %s1109_s29 = scalar_select %p938_p9, 1, 0 }
  0x24   : > { %s951_s7 = scalar_lea.hbm %s1096_s0, %s621_s4  ;;  %s125_s8 = scalar_lea.vmem [#allocation4], %s608_s3 }
  0x25   : > { %s133_s14 = sshll.u32 %s125_s8, 4  ;;  %p953_p11 = pnand %p656_p0, %p35_p3  ;;  %s134_s14 = int_to_ptr.vmem [resolvable:$true] %s133_s14 }
  0x26   : > { %s122_s19 = scalar_lea.sflag [#allocation5], %s121_s30  ;;  %s730_s21 = scalar_lea.hbm %s951_s7, 128 }
  0x27   : > { %p731_p12 = scmp.ne.s32.totalorder %s951_s7, %s730_s21  ;;  %p732_p13 = pneg %p953_p11 }
  0x28   : > { %s735_s24 = scalar_lea.hbm %s1096_s0, 256  ;;  %p736_p10 = scmp.lt.s32.totalorder %s951_s7, %s1096_s0 }
  0x29   : > { %p733_p5 = pnand %p732_p13, %p731_p12  ;;  %p737_p1 = scmp.lt.s32.totalorder %s735_s24, %s730_s21 }
  0x2b   : > { %p734_p7 = pneg %p733_p5  ;;  %p738_p2 = por %p737_p1, %p736_p10 }
  0x2d   : > { %p739_p0 = pnand %p738_p2, %p734_p7 }
  0x2f   : > { %742 = shalt.err (!%p739_p0)
}
  0x30   : > { %s743_s27 = scalar_lea.vmem %s134_s14, 128  ;;  %s829_s30 = smov [#allocation4]  }
  0x31   : > { %p744_p3 = scmp.ne.s32.totalorder %s134_s14, %s743_s27  ;;  %s748_s3 = sshll.u32 %s829_s30, 4  ;;  %s749_s3 = int_to_ptr.vmem [resolvable:$false] %s748_s3 }
  0x32   : > { %s750_s4 = scalar_lea.vmem %s749_s3, 256  ;;  %p751_p12 = scmp.lt.s32.totalorder %s134_s14, %s749_s3 }
  0x33   : > { %p746_p6 = pnand %p744_p3, %p732_p13  ;;  %p752_p5 = scmp.lt.s32.totalorder %s750_s4, %s743_s27 }
  0x35   : > { %p747_p9 = pneg %p746_p6  ;;  %p753_p4 = por %p752_p5, %p751_p12 }
  0x37   : > { %p754_p8 = pnand %p753_p4, %p747_p9 }
  0x39   : > { %757 = shalt.err (!%p754_p8)
}
  0x3a   : > { %650 = dma.hbm_to_vmem [thread:$0]  (!%p953_p11), %s951_s7, 128, %s134_s14, %s122_s19  }
  0x3b   : > { %p1111_p7 = scmp.ne.s32.totalorder %s1105_s17, 0 }
  0x3c   : > { %s974_s5 = sand.u32 (!%p1111_p7), 1, %s818_s10   ;;  %p1112_p6 = scmp.ne.s32.totalorder (!%p1111_p7), %s1103_s15, 0 }
  0x3d   : > { %142 = sbr.rel (%p1111_p7) target bundleno = 754 (0x2f2), region = 28  ;;  %s612_s6 = sshll.u32 (!%p1111_p7), %s974_s5, 3 }
  0x3e   : > { %s145_s8 = scalar_lea.sflag (!%p1111_p7), [#allocation5], %s974_s5  ;;  %s148_s21 = scalar_lea.vmem (!%p1111_p7), [#allocation4], %s612_s6 }
  0x42   : > { %801 = dma.done.wait (%p1112_p6), %s145_s8, 128  }
  0x43   : > { %803 = vsyncadd (%p1112_p6), %s145_s8, 4294967168  ;;  %p1113_p4 = scmp.eq.s32.totalorder %s876_s13, 0 }
  0x45   : > { %805 = dma.done.wait (%p1113_p4), [#allocation8], 128   ;;  %p1114_p8 = pmov %p1113_p4 }
  0x46   : > { %v830_v0 = vmov 0.0   ;;  %s831_s17 = smov 111   ;;  %s832_s7 = smov 113   ;;  %v177_v1 = vld [vmem:[%s148_s21] sm:$0xff]  ;;  %v183_v5 = vlaneseq  ;;  %vm381_vm0 = vcmask 908288   ;;  %vm362_vm3 = vcmask 916480  }
  0x47   : > { %807 = vsyncadd (%p1114_p8), [#allocation8], 4294967168  ;;  %379 = vrot.lane.b32.xlu0 %v830_v0, %s831_s17  ;;  %174 = vst [vmem:[#allocation2] sm:$0xff] %v830_v0  ;;  %339 = vrot.lane.b32.xlu1 %v830_v0, %s832_s7  ;;  %s833_s14 = smov 112   ;;  %v179_v2 = vcombine.high %v177_v1, %v177_v1  ;;  %s834_s15 = smov 127   ;;  %vm341_vm4 = vcmask 924672  }
  0x48   : > { %175 = vst [vmem:[#allocation2 + $0x18] sm:$0xff] %v830_v0  ;;  %477 = vmatprep.mubr.f32.mxu0 %v830_v0  ;;  %181 = vst [vmem:[#allocation2] sm:$0xf] %v177_v1  ;;  %s835_s18 = smov 1   ;;  %s836_s19 = smov 15   ;;  %v184_v7 = vand.u32 127, %v183_v5 }
  0x49   : > { %182 = vst [vmem:[#allocation2 + $0x18] sm:$0xf] %v179_v2  ;;  %s837_s22 = smov 16   ;;  %s838_s23 = smov 17   ;;  %vm320_vm7 = vcmask 1039360   ;;  %vm295_vm8 = vcmask 7168  }
  0x4a   : > { %v185_v10 = vadd.s32 128, %v184_v7  ;;  %v190_v14 = vand.u32 15, %v184_v7  ;;  %vm274_vm9 = vcmask 121856   ;;  %vm251_vm10 = vcmask 130048   ;;  %v390_v53 = vld [vmem:[#allocation7] sm:$0xff]  ;;  %s614_s24 = sshll.u32 %s974_s5, 4 }
  0x4b   : > { %360 = vrot.lane.b32.xlu0 %v830_v0, %s833_s14  ;;  %vm230_vm11 = vcmask 138240   ;;  %vm409_vm12 = vcmask 588800   ;;  %s622_s25 = sshll.u32 %s876_s13, 8  ;;  %s172_s26 = scalar_lea.vmem [#allocation9], %s614_s24 }
  0x4c   : > { %v197_v11 = vand.u32 15, %v185_v10  ;;  %vm1010_vm2 = vcmp.le.s32.totalorder %v190_v14, 14  ;;  %vm1022_vm6 = vcmp.ge.s32.totalorder %v190_v14, 1  ;;  %s524_s27 = sshll.u32 %s172_s26, 4  ;;  %s1053_s4 = scalar_lea.hbm %s1098_s2, %s622_s25  ;;  %s1055_s27 = int_to_ptr.vmem [resolvable:$true] %s524_s27 }
  0x4d   : > { %s510_s13 = scalar_lea.sflag [#allocation6], %s974_s5  ;;  %s758_s6 = scalar_lea.vmem %s1055_s27, 256 }
  0x4e   : > { %vm1006_vm1 = vcmp.le.s32.totalorder %v197_v11, 14  ;;  %vm1018_vm5 = vcmp.ge.s32.totalorder %v197_v11, 1  ;;  %p759_p9 = scmp.ne.s32.totalorder %s1055_s27, %s758_s6  ;;  %p1123_p11 = scmp.ne.s32.totalorder %s1109_s29, 0 }
  0x4f   : > { %v986_v3 = vld [vmem:[#allocation2] sm:$0xff]  ;;  %s839_s8 = smov [#allocation9]  }
  0x50   : > { %375 = vrot.lane.b32.xlu1 %v986_v3, %s831_s17  ;;  %335 = vrot.lane.b32.xlu0 %v986_v3, %s832_s7  ;;  %v990_v4 = vld [vmem:[#allocation2 + $0x18] sm:$0xff]  ;;  %p760_p13 = pnand %p759_p9, %p1123_p11  ;;  %s762_s21 = sshll.u32 %s839_s8, 4  ;;  %s763_s21 = int_to_ptr.vmem [resolvable:$false] %s762_s21 }
  0x51   : > { %p765_p1 = scmp.lt.s32.totalorder %s1055_s27, %s763_s21 }
  0x52   : > { %p761_p10 = pneg %p760_p13 }
  0x54   : > { %356 = vrot.lane.b32.xlu1 %v986_v3, %s833_s14  ;;  %377 = vrot.lane.b32.xlu0 %v990_v4, %s831_s17  ;;  %s764_s17 = scalar_lea.vmem %s763_s21, 512 }
  0x55   : > { %p766_p2 = scmp.lt.s32.totalorder %s764_s17, %s758_s6 }
  0x57   : > { %p767_p0 = por %p766_p2, %p765_p1 }
  0x58   : > { %358 = vrot.lane.b32.xlu1 %v990_v4, %s833_s14  ;;  %337 = vrot.lane.b32.xlu0 %v990_v4, %s832_s7 }
  0x59   : > { %p768_p3 = pnand %p767_p0, %p761_p10 }
  0x5c   : > { %316 = vrot.lane.b32.xlu1 %v990_v4, %s834_s15  ;;  %318 = vrot.lane.b32.xlu0 %v830_v0, %s834_s15 }
  0x60   : > { %314 = vrot.lane.b32.xlu1 %v986_v3, %s834_s15  ;;  %291 = vrot.lane.b32.xlu0 %v986_v3, %s835_s18 }
  0x64   : > { %293 = vrot.lane.b32.xlu1 %v990_v4, %s835_s18  ;;  %289 = vrot.lane.b32.xlu0 %v830_v0, %s835_s18 }
  0x68   : > { %270 = vrot.lane.b32.xlu1 %v986_v3, %s836_s19  ;;  %272 = vrot.lane.b32.xlu0 %v990_v4, %s836_s19 }
  0x6c   : > { %268 = vrot.lane.b32.xlu1 %v830_v0, %s836_s19  ;;  %247 = vrot.lane.b32.xlu0 %v986_v3, %s837_s22 }
  0x70   : > { %249 = vrot.lane.b32.xlu1 %v990_v4, %s837_s22  ;;  %245 = vrot.lane.b32.xlu0 %v830_v0, %s837_s22 }
  0x74   : > { %226 = vrot.lane.b32.xlu1 %v986_v3, %s838_s23  ;;  %228 = vrot.lane.b32.xlu0 %v990_v4, %s838_s23 }
  0x78   : > { %224 = vrot.lane.b32.xlu1 %v830_v0, %s838_s23 }
  0xb9   : > { %v380_v6 = vpop.permute.xlu0 %379  ;;  %v340_v8 = vpop.permute.xlu1 %339 }
  0xbd   : > { %v361_v9 = vpop.permute.xlu0 %360 }
  0xc2   : > { %v376_v12 = vpop.permute.xlu1 %375  ;;  %v336_v13 = vpop.permute.xlu0 %335 }
  0xc6   : > { %v357_v16 = vpop.permute.xlu1 %356  ;;  %v378_v17 = vpop.permute.xlu0 %377 }
  0xc7   : > { %v383_v19 = vsel %vm381_vm0, %v378_v17, %v380_v6  ;;  %v382_v20 = vsel %vm381_vm0, %v376_v12, %v378_v17 }
  0xc8   : > { %623 = vmatprep.subr.msk.mxu0 %vm1006_vm1, %v383_v19 }
  0xc9   : > { %624 = vmatpush1.msk.msra.mxu0 %vm1010_vm2, %v382_v20 }
  0xca   : > { %v359_v21 = vpop.permute.xlu1 %358  ;;  %v338_v22 = vpop.permute.xlu0 %337 }
  0xcb   : > { %v364_v23 = vsel %vm362_vm3, %v359_v21, %v361_v9  ;;  %v363_v24 = vsel %vm362_vm3, %v357_v16, %v359_v21  ;;  %v343_v27 = vsel %vm341_vm4, %v338_v22, %v340_v8  ;;  %v342_v28 = vsel %vm341_vm4, %v336_v13, %v338_v22 }
  0xcc   : > { %429 = vmatprep.subr.mxu0 %v364_v23 }
  0xcd   : > { %430 = vmatpush1.msra.mxu0 %v363_v24 }
  0xce   : > { %v317_v29 = vpop.permute.xlu1 %316  ;;  %625 = vmatprep.subr.msk.mxu0 %vm1018_vm5, %v343_v27  ;;  %v319_v30 = vpop.permute.xlu0 %318 }
  0xcf   : > { %626 = vmatpush1.msk.msra.mxu0 %vm1022_vm6, %v342_v28  ;;  %v322_v31 = vsel %vm320_vm7, %v317_v29, %v319_v30 }
  0xd0   : > { %627 = vmatprep.subr.msk.mxu0 %vm1006_vm1, %v322_v31 }
  0xd2   : > { %v315_v32 = vpop.permute.xlu1 %314  ;;  %v292_v33 = vpop.permute.xlu0 %291 }
  0xd3   : > { %v321_v34 = vsel %vm320_vm7, %v315_v32, %v317_v29 }
  0xd4   : > { %628 = vmatpush1.msk.msra.mxu0 %vm1010_vm2, %v321_v34 }
  0xd5   : > { %435 = vmatprep.subr.mxu0 %v990_v4 }
  0xd6   : > { %v294_v35 = vpop.permute.xlu1 %293  ;;  %436 = vmatpush1.msra.mxu0 %v986_v3  ;;  %v290_v36 = vpop.permute.xlu0 %289 }
  0xd7   : > { %v297_v37 = vsel %vm295_vm8, %v292_v33, %v294_v35  ;;  %v296_v38 = vsel %vm295_vm8, %v290_v36, %v292_v33 }
  0xd8   : > { %629 = vmatprep.subr.msk.mxu0 %vm1018_vm5, %v297_v37 }
  0xd9   : > { %630 = vmatpush1.msk.msra.mxu0 %vm1022_vm6, %v296_v38 }
  0xda   : > { %v271_v39 = vpop.permute.xlu1 %270  ;;  %v273_v40 = vpop.permute.xlu0 %272 }
  0xdb   : > { %v276_v41 = vsel %vm274_vm9, %v271_v39, %v273_v40 }
  0xdc   : > { %631 = vmatprep.subr.msk.mxu0 %vm1006_vm1, %v276_v41 }
  0xde   : > { %v269_v42 = vpop.permute.xlu1 %268  ;;  %v248_v43 = vpop.permute.xlu0 %247 }
  0xdf   : > { %v275_v44 = vsel %vm274_vm9, %v269_v42, %v271_v39 }
  0xe0   : > { %632 = vmatpush1.msk.msra.mxu0 %vm1010_vm2, %v275_v44 }
  0xe2   : > { %v250_v45 = vpop.permute.xlu1 %249  ;;  %v246_v46 = vpop.permute.xlu0 %245 }
  0xe3   : > { %v253_v47 = vsel %vm251_vm10, %v248_v43, %v250_v45  ;;  %v252_v48 = vsel %vm251_vm10, %v246_v46, %v248_v43 }
  0xe4   : > { %441 = vmatprep.subr.mxu0 %v253_v47 }
  0xe5   : > { %442 = vmatpush1.msra.mxu0 %v252_v48 }
  0xe6   : > { %v227_v49 = vpop.permute.xlu1 %226  ;;  %v229_v50 = vpop.permute.xlu0 %228 }
  0xe7   : > { %v232_v51 = vsel %vm230_vm11, %v227_v49, %v229_v50 }
  0xe8   : > { %633 = vmatprep.subr.msk.mxu0 %vm1018_vm5, %v232_v51 }
  0xea   : > { %v225_v52 = vpop.permute.xlu1 %224 }
  0xeb   : > { %v231_v54 = vsel %vm230_vm11, %v225_v52, %v227_v49 }
  0xec   : > { %634 = vmatpush1.msk.msra.mxu0 %vm1022_vm6, %v231_v54 }
  0xed   : > { %615 = vmatmul.mubr.msk.f32.vlgmr.msra.gmra.mxu0 %vm409_vm12, %v390_v53 }
 0x1ad   : > { %v479_v55 = vpop.f32.mrf.mxu0 }
 0x1af   : > { %v481_v56 = vpop.f32.mrf.mxu0 }
 0x1b0   : > { %v484_v57 = vadd.f32 %v481_v56, %v479_v55 }
 0x1b2   : > { %485 = vadd.xlane.f32.xlu0 %v484_v57 }
 0x23b   : > { %v486_v58 = vpop.xlane.xlu0 %485 }
 0x23c   : > { %v488_v59 = vmul.f32 0.00390625, %v486_v58 }
 0x23e   : > { %v489_v60 = vsub.f32 %v479_v55, %v488_v59  ;;  %v490_v61 = vsub.f32 %v481_v56, %v488_v59 }
 0x240   : > { %v491_v62 = vmul.f32 %v489_v60, %v489_v60  ;;  %v492_v63 = vmul.f32 %v490_v61, %v490_v61 }
 0x242   : > { %v493_v0 = vadd.f32 %v492_v63, %v491_v62 }
 0x244   : > { %494 = vadd.xlane.f32.xlu1 %v493_v0 }
 0x2cd   : > { %v495_v1 = vpop.xlane.xlu1 %494 }
 0x2ce   : > { %v496_v2 = vmul.f32 0.00390625, %v495_v1 }
 0x2d0   : > { %v497_v3 = vadd.f32 1e-05, %v496_v2 }
 0x2d2   : > { %702 = vrsqrt.f32 %v497_v3 }
 0x2df   : > { %v703_v4 = vpop.eup %702 }
 0x2e0   : > { %v499_v5 = vmul.f32 %v703_v4, %v489_v60  ;;  %v500_v6 = vmul.f32 %v703_v4, %v490_v61 }
 0x2e2   : > { %vm501_vm13 = vcmp.gt.f32.partialorder %v499_v5, 0.0  ;;  %vm502_vm14 = vcmp.gt.f32.partialorder %v500_v6, 0.0  ;;  %v503_v7 = vmul.f32 0.2, %v499_v5  ;;  %v504_v8 = vmul.f32 0.2, %v500_v6 }
 0x2e4   : > { %v505_v9 = vsel %vm501_vm13, %v499_v5, %v503_v7  ;;  %v506_v10 = vsel %vm502_vm14, %v500_v6, %v504_v8 }
 0x2e5   : > { %507 = vst [vmem:[%s172_s26] sm:$0xff] %v505_v9  ;;  %508 = vst [vmem:[%s172_s26 + $0x8] sm:$0xff] %v506_v10 }
 0x2e6   : > { %771 = shalt.err (!%p768_p3)
}
 0x2e7   : > { %s772_s7 = scalar_lea.hbm %s1053_s4, 256  ;;  %s776_s15 = scalar_lea.hbm %s1098_s2, 512 }
 0x2e8   : > { %p773_p12 = scmp.ne.s32.totalorder %s1053_s4, %s772_s7  ;;  %p777_p6 = scmp.lt.s32.totalorder %s1053_s4, %s1098_s2 }
 0x2e9   : > { %p778_p4 = scmp.lt.s32.totalorder %s776_s15, %s772_s7 }
 0x2ea   : > { %p774_p5 = pnand %p773_p12, %p1123_p11 }
 0x2eb   : > { %p779_p8 = por %p778_p4, %p777_p6 }
 0x2ec   : > { %p775_p7 = pneg %p774_p5 }
 0x2ee   : > { %p780_p9 = pnand %p779_p8, %p775_p7 }
 0x2f0   : > { %783 = shalt.err (!%p780_p9)
}
 0x2f1   : > { %641 = dma.vmem_to_hbm [thread:$0]  (%p1123_p11), %s1055_s27, 256, %s1053_s4, %s510_s13  }
 0x2f2 PF: > { %s536_s22 = sand.u32 1, %s814_s9   ;;  %p1124_p13 = scmp.ne.s32.totalorder %s1104_s16, 0 }
 0x2f3   : > { %p1125_p10 = scmp.ge.s32.totalorder %s826_s12, 2  ;;  %s537_s23 = scalar_lea.sflag [#allocation6], %s536_s22 }
 0x2f5   : > { %p652_p1 = pnand %p1125_p10, %p1124_p13 }
 0x2f7   : > { %p653_p2 = pneg %p652_p1 }
 0x2f9   : > { %809 = dma.done.wait (%p653_p2), %s537_s23, 256  }
 0x2fa   : > { %811 = vsyncadd (%p653_p2), %s537_s23, 4294967040  ;;  %p16_p0 = scmp.ge.s32.totalorder %s903_s20, 4   ;;  %s1126_s9 = smov %s818_s10 }
 0x2fb   : > { %s1127_s10 = smov %s822_s11  ;;  %s1128_s11 = smov %s930_s28 }
 0x2fc   : > { %s1129_s12 = smov %s903_s20  ;;  %18 = sbr.rel (!%p16_p0) target bundleno = 6 (0x6), region = 77 }
 0x301   :  { %542 = vsyncpa [#allocation5], 1 }
 0x302   :  { %544 = vsyncpa [#allocation5 + $0x1], 1 }
 0x303   :  { %545 = vsyncpa [#allocation8], 1 }
 0x304   :  { %546 = vsyncpa [#allocation6], 1 }
 0x305   :  { %548 = vsyncpa [#allocation6 + $0x1], 1 }

</bundles_post_ra>
